<compile_context>
chip_gen: v5e
topology: v5e:2x2
jax: 0.10.0
libtpu: 0.0.40
codegen_flags: <defaults>
</compile_context>

<pallas_src>
import jax
import jax.numpy as jnp
from jax.experimental import pallas as pl
from jax.experimental.pallas import tpu as pltpu

SUBLANE = 8       # f32 sublane granularity for the batch tile
MAX_TILE_B = 1024 # batch rows per grid step (x tile <= 1024*in_dims*4 B in VMEM)


def _round_up(n, m):
    return ((n + m - 1) // m) * m


def _pick_tile_b(batch):
    """Largest 8-aligned batch tile <= MAX_TILE_B, capped near B/2 so large
    batches get >= 2 grid steps (lets v7x shard across both TensorCores)."""
    half = _round_up(pl.cdiv(batch, 2), SUBLANE)
    return min(MAX_TILE_B, max(SUBLANE, half))


def _mlp_kernel(x_ref, w1_ref, b1_ref, w2_ref, b2_ref, w3_ref, b3_ref, o_ref):
    # Layer 1: x @ W1 + b1, ReLU  (f32 operands, f32 accumulation on the MXU)
    h = jnp.dot(x_ref[...], w1_ref[...], preferred_element_type=jnp.float32)
    h = jnp.maximum(h + b1_ref[...], 0.0)
    # Layer 2: h @ W2 + b2, ReLU
    h = jnp.dot(h, w2_ref[...], preferred_element_type=jnp.float32)
    h = jnp.maximum(h + b2_ref[...], 0.0)
    # Output layer: h @ W3 + b3  (true-width store; squeeze(1) happens in wrapper)
    out = jnp.dot(h, w3_ref[...], preferred_element_type=jnp.float32)
    o_ref[...] = (out + b3_ref[...]).astype(o_ref.dtype)


@jax.jit
def mlp_forward(x, params):
    """x: (B, input_dims) float32.  Returns the PyTorch-equivalent of
    MLP.forward(x): (B, output_dims) with axis 1 squeezed if it has size 1."""
    w1, b1, w2, b2, w3, b3 = params
    B, in_dims = x.shape
    hid = w1.shape[1]
    out_dims = w3.shape[1]

    tile_b = _pick_tile_b(B)
    grid = (pl.cdiv(B, tile_b),)   # partial last tile handled by Pallas masking

    const = lambda i: (0, 0)       # weights/biases resident across all grid steps
    out = pl.pallas_call(
        _mlp_kernel,
        out_shape=jax.ShapeDtypeStruct((B, out_dims), jnp.float32),
        grid=grid,
        in_specs=[
            pl.BlockSpec((tile_b, in_dims), lambda i: (i, 0)),  # x: streamed tiles
            pl.BlockSpec((in_dims, hid), const),                # W1 (full array)
            pl.BlockSpec((1, hid), const),                      # b1
            pl.BlockSpec((hid, hid), const),                    # W2
            pl.BlockSpec((1, hid), const),                      # b2
            pl.BlockSpec((hid, out_dims), const),               # W3
            pl.BlockSpec((1, out_dims), const),                 # b3
        ],
        out_specs=pl.BlockSpec((tile_b, out_dims), lambda i: (i, 0)),  # true width
        compiler_params=pltpu.CompilerParams(
            dimension_semantics=("parallel",),
        ),
    )(x, w1, b1, w2, b2, w3, b3)

    # PyTorch's out.squeeze(1): drop axis 1 only if it has size 1.
    if out.shape[1] == 1:
        out = jnp.squeeze(out, axis=1)
    return out


def init_params(key, input_dims, hidden_dims, output_dims):
    """Deterministic init mimicking nn.Linear default: U(-1/sqrt(fan_in), +1/sqrt(fan_in)).
    Weights stored as (in_features, out_features); biases as (1, out_features).
    This is already the kernel-ready layout (no per-call packing needed)."""
    def linear(k, fan_in, fan_out):
        kw, kb = jax.random.split(k)
        bound = 1.0 / jnp.sqrt(fan_in)
        w = jax.random.uniform(kw, (fan_in, fan_out), jnp.float32, -bound, bound)
        b = jax.random.uniform(kb, (1, fan_out), jnp.float32, -bound, bound)
        return w, b

    k1, k2, k3 = jax.random.split(key, 3)
    w1, b1 = linear(k1, input_dims, hidden_dims)
    w2, b2 = linear(k2, hidden_dims, hidden_dims)
    w3, b3 = linear(k3, hidden_dims, output_dims)
    return (w1, b1, w2, b2, w3, b3)


if __name__ == "__main__":
    key = jax.random.PRNGKey(0)
    k_params, k_x = jax.random.split(key)

    batch = 8
    input_dims = 16
    hidden_dims = 32
    output_dims = 1  # squeeze(1) in the reference implies a size-1 output axis

    params = init_params(k_params, input_dims, hidden_dims, output_dims)
    x = jax.random.normal(k_x, (batch, input_dims), jnp.float32)

    out = mlp_forward(x, params)
    jax.block_until_ready(out)

    # Sanity check against a plain-JAX f32 reference of the same math.
    w1, b1, w2, b2, w3, b3 = params
    ref = jnp.maximum(x @ w1 + b1, 0.0)
    ref = jnp.maximum(ref @ w2 + b2, 0.0)
    ref = (ref @ w3 + b3).squeeze(1)
    assert out.shape == (batch,), out.shape
    assert jnp.allclose(out, ref, atol=1e-3, rtol=1e-3), "mismatch vs reference"

    print("KERNEL_OK")
</pallas_src>

<mosaic_0001>
module attributes {stable_mosaic.version = 11 : i64} {
  func.func @_mlp_kernel(%arg0: i32, %arg1: memref<8x16xf32, #tpu.memory_space<vmem>>, %arg2: memref<16x32xf32, #tpu.memory_space<vmem>>, %arg3: memref<1x32xf32, #tpu.memory_space<vmem>>, %arg4: memref<32x32xf32, #tpu.memory_space<vmem>>, %arg5: memref<1x32xf32, #tpu.memory_space<vmem>>, %arg6: memref<32x1xf32, #tpu.memory_space<vmem>>, %arg7: memref<1x1xf32, #tpu.memory_space<vmem>>, %arg8: memref<8x1xf32, #tpu.memory_space<vmem>>) attributes {dimension_semantics = [#tpu.dimension_semantics<parallel>], iteration_bounds = array<i64: 1>, scalar_prefetch = 0 : i64, scratch_operands = 0 : i64, tpu.core_type = #tpu.core_type<tc>, window_params = [{transform_indices = @transform_0, window_bounds = array<i64: 8, 16>}, {pipeline_mode = #tpu.pipeline_mode<synchronous>, transform_indices = @transform_1, window_bounds = array<i64: 16, 32>}, {pipeline_mode = #tpu.pipeline_mode<synchronous>, transform_indices = @transform_2, window_bounds = array<i64: 1, 32>}, {pipeline_mode = #tpu.pipeline_mode<synchronous>, transform_indices = @transform_3, window_bounds = array<i64: 32, 32>}, {pipeline_mode = #tpu.pipeline_mode<synchronous>, transform_indices = @transform_4, window_bounds = array<i64: 1, 32>}, {pipeline_mode = #tpu.pipeline_mode<synchronous>, transform_indices = @transform_5, window_bounds = array<i64: 32, 1>}, {pipeline_mode = #tpu.pipeline_mode<synchronous>, transform_indices = @transform_6, window_bounds = array<i64: 1, 1>}, {transform_indices = @transform_7, window_bounds = array<i64: 8, 1>}]} {
    %c0 = arith.constant 0 : index
    %c0_0 = arith.constant 0 : index
    %0 = vector.load %arg1[%c0, %c0_0] : memref<8x16xf32, #tpu.memory_space<vmem>>, vector<8x16xf32>
    %c0_1 = arith.constant 0 : index
    %c0_2 = arith.constant 0 : index
    %1 = vector.load %arg2[%c0_1, %c0_2] : memref<16x32xf32, #tpu.memory_space<vmem>>, vector<16x32xf32>
    %cst = arith.constant dense<0.000000e+00> : vector<8x32xf32>
    %2 = tpu.matmul %0, %1, %cst {dimension_numbers = #tpu.dot_dimension_numbers<[1], [0], [0], [1], [0, 0, 1, 1], [], []>} : vector<8x16xf32>, vector<16x32xf32>, vector<8x32xf32> -> vector<8x32xf32>
    %c0_3 = arith.constant 0 : index
    %c0_4 = arith.constant 0 : index
    %3 = vector.load %arg3[%c0_3, %c0_4] : memref<1x32xf32, #tpu.memory_space<vmem>>, vector<1x32xf32>
    %4 = vector.broadcast %3 : vector<1x32xf32> to vector<8x32xf32>
    %5 = arith.addf %2, %4 : vector<8x32xf32>
    %cst_5 = arith.constant 0.000000e+00 : f32
    %6 = vector.broadcast %cst_5 : f32 to vector<8x32xf32>
    %7 = arith.maximumf %5, %6 : vector<8x32xf32>
    %c0_6 = arith.constant 0 : index
    %c0_7 = arith.constant 0 : index
    %8 = vector.load %arg4[%c0_6, %c0_7] : memref<32x32xf32, #tpu.memory_space<vmem>>, vector<32x32xf32>
    %cst_8 = arith.constant dense<0.000000e+00> : vector<8x32xf32>
    %9 = tpu.matmul %7, %8, %cst_8 {dimension_numbers = #tpu.dot_dimension_numbers<[1], [0], [0], [1], [0, 0, 1, 1], [], []>} : vector<8x32xf32>, vector<32x32xf32>, vector<8x32xf32> -> vector<8x32xf32>
    %c0_9 = arith.constant 0 : index
    %c0_10 = arith.constant 0 : index
    %10 = vector.load %arg5[%c0_9, %c0_10] : memref<1x32xf32, #tpu.memory_space<vmem>>, vector<1x32xf32>
    %11 = vector.broadcast %10 : vector<1x32xf32> to vector<8x32xf32>
    %12 = arith.addf %9, %11 : vector<8x32xf32>
    %cst_11 = arith.constant 0.000000e+00 : f32
    %13 = vector.broadcast %cst_11 : f32 to vector<8x32xf32>
    %14 = arith.maximumf %12, %13 : vector<8x32xf32>
    %c0_12 = arith.constant 0 : index
    %c0_13 = arith.constant 0 : index
    %15 = vector.load %arg6[%c0_12, %c0_13] : memref<32x1xf32, #tpu.memory_space<vmem>>, vector<32x1xf32>
    %cst_14 = arith.constant dense<0.000000e+00> : vector<8x1xf32>
    %16 = tpu.matmul %14, %15, %cst_14 {dimension_numbers = #tpu.dot_dimension_numbers<[1], [0], [0], [1], [0, 0, 1, 1], [], []>} : vector<8x32xf32>, vector<32x1xf32>, vector<8x1xf32> -> vector<8x1xf32>
    %c0_15 = arith.constant 0 : index
    %c0_16 = arith.constant 0 : index
    %17 = vector.load %arg7[%c0_15, %c0_16] : memref<1x1xf32, #tpu.memory_space<vmem>>, vector<1x1xf32>
    %18 = vector.broadcast %17 : vector<1x1xf32> to vector<8x1xf32>
    %19 = arith.addf %16, %18 : vector<8x1xf32>
    %c0_17 = arith.constant 0 : index
    %c0_18 = arith.constant 0 : index
    %20 = vector.load %arg8[%c0_17, %c0_18] : memref<8x1xf32, #tpu.memory_space<vmem>>, vector<8x1xf32>
    tpu.vector_store %arg8[%c0_17, %c0_18], %19 {strides = array<i32>} : memref<8x1xf32, #tpu.memory_space<vmem>>, vector<8x1xf32>,
    return
  }
  func.func @transform_0(%arg0: i32) -> (i32, i32) {
    %c0_i32 = arith.constant 0 : i32
    %c0_i32_0 = arith.constant 0 : i32
    return %arg0, %c0_i32 : i32, i32
  }
  func.func @transform_1(%arg0: i32) -> (i32, i32) {
    %c0_i32 = arith.constant 0 : i32
    %c0_i32_0 = arith.constant 0 : i32
    %c0_i32_1 = arith.constant 0 : i32
    return %c0_i32, %c0_i32_0 : i32, i32
  }
  func.func @transform_2(%arg0: i32) -> (i32, i32) {
    %c0_i32 = arith.constant 0 : i32
    %c0_i32_0 = arith.constant 0 : i32
    %c0_i32_1 = arith.constant 0 : i32
    return %c0_i32, %c0_i32_0 : i32, i32
  }
  func.func @transform_3(%arg0: i32) -> (i32, i32) {
    %c0_i32 = arith.constant 0 : i32
    %c0_i32_0 = arith.constant 0 : i32
    %c0_i32_1 = arith.constant 0 : i32
    return %c0_i32, %c0_i32_0 : i32, i32
  }
  func.func @transform_4(%arg0: i32) -> (i32, i32) {
    %c0_i32 = arith.constant 0 : i32
    %c0_i32_0 = arith.constant 0 : i32
    %c0_i32_1 = arith.constant 0 : i32
    return %c0_i32, %c0_i32_0 : i32, i32
  }
  func.func @transform_5(%arg0: i32) -> (i32, i32) {
    %c0_i32 = arith.constant 0 : i32
    %c0_i32_0 = arith.constant 0 : i32
    %c0_i32_1 = arith.constant 0 : i32
    return %c0_i32, %c0_i32_0 : i32, i32
  }
  func.func @transform_6(%arg0: i32) -> (i32, i32) {
    %c0_i32 = arith.constant 0 : i32
    %c0_i32_0 = arith.constant 0 : i32
    %c0_i32_1 = arith.constant 0 : i32
    return %c0_i32, %c0_i32_0 : i32, i32
  }
  func.func @transform_7(%arg0: i32) -> (i32, i32) {
    %c0_i32 = arith.constant 0 : i32
    %c0_i32_0 = arith.constant 0 : i32
    return %arg0, %c0_i32 : i32, i32
  }
}

</mosaic_0001>

<bundles_post_ra>
// kernel: mlp_forward.1
= control target key start
LH: loop header
LB: loop body
LE: loop exit
PB: predicated region body
PF: predicated region fallthrough
CT: control target
= control target key end

     0   :  { %s310_s0 = inlined_call_operand.hbm [shape: f32[8,16], index: 0, kind: input, shape index: {}]   ;;  %s311_s1 = inlined_call_operand.hbm [shape: f32[16,32], index: 1, kind: input, shape index: {}]   ;;  %s312_s2 = inlined_call_operand.vmem [shape: f32[1,32], index: 2, kind: input, shape index: {}]   ;;  %s313_s3 = inlined_call_operand.vmem [shape: f32[32,32], index: 3, kind: input, shape index: {}]   ;;  %s314_s4 = inlined_call_operand.vmem [shape: f32[1,32], index: 4, kind: input, shape index: {}]   ;;  %s315_s5 = inlined_call_operand.vmem [shape: f32[32,1], index: 5, kind: input, shape index: {}]   ;;  %s316_s6 = inlined_call_operand.<no memory space> [shape: f32[1,1], index: 6, kind: input, shape index: {}]   ;;  %s317_s7 = inlined_call_operand.vmem [shape: f32[8,1], index: 7, kind: output, shape index: {}]  }
   0x1   :  { %v12_v0 = vstv %s316_s6 }
   0x2   :  { %13 = vst [vmem:[#allocation2] sm:$0x1] %v12_v0 }
   0x3   :  { %14 = vsyncpa [#allocation4], 0  ;;  %s21_s28 = sshll.u32 %s310_s0, 4  ;;  %s22_s28 = int_to_ptr.hbm [resolvable:$true] %s21_s28 }
   0x4   :  { %15 = vsyncpa [#allocation6], 0  ;;  %s224_s29 = smov [#allocation3]   ;;  %s31_s10 = sshll.u32 %s311_s1, 4  ;;  %s32_s10 = int_to_ptr.hbm [resolvable:$true] %s31_s10 }
   0x5   :  { %s23_s30 = sshll.u32 %s224_s29, 4  ;;  %s225_s11 = smov [#allocation5]   ;;  %s24_s30 = int_to_ptr.vmem [resolvable:$true] %s23_s30 }
   0x6   :  { %26 = dma.hbm_to_vmem [thread:$0]  %s22_s28, 128, %s24_s30, [#allocation4]  }
   0x7   :  { %s33_s12 = sshll.u32 %s225_s11, 4  ;;  %s226_s6 = smov 128   ;;  %s34_s12 = int_to_ptr.vmem [resolvable:$true] %s33_s12 }
   0x8   :  { %s227_s13 = smov 8  }
   0x9   :  { %39 = dma.hbm_to_vmem [thread:$0]  %s32_s10, 256, %s34_s12, [#allocation6], %s226_s6, %s226_s6, %s227_s13  }
   0xa   :  { %220 = dma.done.wait [#allocation4], 128  }
   0xb   :  { %221 = vsyncadd [#allocation4], 4294967168 }
   0xc   :  { %222 = dma.done.wait [#allocation6], 256  }
   0xd   :  { %223 = vsyncadd [#allocation6], 4294967040  ;;  %v60_v1 = vld [vmem:[#allocation5 + $0x8] sm:$0xff]  ;;  %v59_v2 = vld [vmem:[#allocation5] sm:$0xff]  ;;  %vm65_vm0 = vcmask 130048   ;;  %vm98_vm1 = vcmask 261120  }
   0xe   :  { %83 = vmatpush.msra.mxu0 %v60_v1  ;;  %v58_v3 = vld [vmem:[#allocation3] sm:$0xff]  ;;  %v93_v4 = vld [vmem:[%s313_s3 + $0x18] sm:$0xff]  ;;  %v92_v5 = vld [vmem:[%s313_s3 + $0x10] sm:$0xff]  ;;  %vm154_vm2 = vcmask 7168  }
   0xf   :  { %114 = vmatpush.msra.mxu1 %v93_v4  ;;  %v91_v6 = vld [vmem:[%s313_s3 + $0x8] sm:$0xff]  ;;  %v90_v7 = vld [vmem:[%s313_s3] sm:$0xff]  ;;  %v126_v8 = vld [vmem:[%s315_s5 + $0x18] sm:$0xff] }
  0x10   :  { %84 = vmatpush.msra.mxu0 %v59_v2  ;;  %146 = vmatpush.msra.mxu2 %v126_v8  ;;  %v169_v9 = vld [vmem:[%s312_s2] ss:$0 sm:$0xff]  ;;  %v125_v13 = vld [vmem:[%s315_s5 + $0x10] sm:$0xff]  ;;  %v124_v14 = vld [vmem:[%s315_s5 + $0x8] sm:$0xff] }
  0x11   :  { %162 = vmatmul.msk.f32.vlgmr.msra.gmra.mxu0 %vm65_vm0, %v58_v3  ;;  %115 = vmatpush.msra.mxu1 %v92_v5  ;;  %v123_v15 = vld [vmem:[%s315_s5] sm:$0xff] }
  0x12   :  { %147 = vmatpush.msra.mxu2 %v125_v13  ;;  %v170_v16 = vld [vmem:[%s314_s4] ss:$0 sm:$0xff] }
  0x13   :  { %116 = vmatpush.msra.mxu1 %v91_v6  ;;  %v171_v20 = vld [vmem:[#allocation2] ss:$0 sm:$0xff] }
  0x14   :  { %148 = vmatpush.msra.mxu2 %v124_v14 }
  0x15   :  { %117 = vmatpush.msra.mxu1 %v90_v7 }
  0x16   :  { %149 = vmatpush.msra.mxu2 %v123_v15 }
  0x8e   :  { %v86_v10 = vpop.f32.mrf.mxu0 }
  0x8f   :  { %v87_v11 = vadd.f32 %v169_v9, %v86_v10 }
  0x91   :  { %v89_v12 = vmax.f32 %v87_v11, 0.0 }
  0x93   :  { %163 = vmatmul.msk.f32.vlgmr.msra.gmra.mxu1 %vm98_vm1, %v89_v12 }
 0x110   :  { %v119_v17 = vpop.f32.mrf.mxu1 }
 0x111   :  { %v120_v18 = vadd.f32 %v170_v16, %v119_v17 }
 0x113   :  { %v122_v19 = vmax.f32 %v120_v18, 0.0 }
 0x115   :  { %164 = vmatmul.msk.f32.vlgmr.msra.gmra.mxu2 %vm98_vm1, %v122_v19 }
 0x198   :  { %v151_v21 = vpop.f32.mrf.mxu2 }
 0x199   :  { %v152_v22 = vadd.f32 %v171_v20, %v151_v21 }
 0x19b   :  { %155 = vst.msk [vmem:[%s317_s7] sm:$0xff] %vm154_vm2, %v152_v22 }
 0x19c   :  { %160 = vsyncpa [#allocation4], 1 }
 0x19d   :  { %161 = vsyncpa [#allocation6], 1 }

</bundles_post_ra>
